<compile_context>
chip_gen: v7x
topology: tpu7x:2x2x1
jax: 0.10.0
libtpu: 0.0.40
codegen_flags: <defaults>
</compile_context>

<pallas_src>
import jax
import jax.numpy as jnp
from jax.experimental import pallas as pl
from jax.experimental.pallas import tpu as pltpu


def _triplet_embed_kernel(
    x1_ref, x2_ref, x3_ref, w1_ref, b1_ref, w2_ref, b2_ref, o_ref, xcat_ref
):
    # x1/x2/x3 : (B, D)  f32   one triplet branch each
    # w1       : (D, H)  bf16  shared first-layer weight
    # b1       : (1, H)  f32
    # w2       : (H, E)  bf16  shared second-layer weight
    # b2       : (1, E)  f32
    # o_ref    : (M_pad, E) f32 output slab (rows 0..3B are the embeddings)
    # xcat_ref : (M_pad, D) f32 VMEM scratch used to fuse the triplet axis
    B = x1_ref.shape[0]

    # Gather the three branches into one padded batch so both matmuls run as a
    # single MXU pass (weights loaded once).  Zero-init covers the pad rows.
    xcat_ref[...] = jnp.zeros_like(xcat_ref)
    xcat_ref[pl.ds(0 * B, B), :] = x1_ref[...]
    xcat_ref[pl.ds(1 * B, B), :] = x2_ref[...]
    xcat_ref[pl.ds(2 * B, B), :] = x3_ref[...]

    x = xcat_ref[...].astype(jnp.bfloat16)  # bf16 MXU operand, f32 accumulate
    h = jnp.dot(x, w1_ref[...], preferred_element_type=jnp.float32) + b1_ref[...]
    h = jnp.maximum(h, 0.0).astype(jnp.bfloat16)  # ReLU
    e = jnp.dot(h, w2_ref[...], preferred_element_type=jnp.float32) + b2_ref[...]

    o_ref[...] = e.astype(o_ref.dtype)  # (M_pad, 128): aligned, unmasked store


def triplet_net(i1, i2, i3, w1, b1, w2, b2):
    """Shared-embedding forward for the triplet; returns (E1, E2, E3)."""
    B = i1.shape[0]
    D = i1.shape[1] * i1.shape[2] * i1.shape[3]
    H = w1.shape[1]
    E = w2.shape[1]

    M = 3 * B
    M_pad = ((M + 7) // 8) * 8  # sublane-align the fused batch axis

    # Row-major flatten (matches torch's x.view(B, -1)); these reshapes are
    # free metadata ops — no stacked (3, B, D) intermediate is materialized.
    x1 = i1.reshape(B, D)
    x2 = i2.reshape(B, D)
    x3 = i3.reshape(B, D)

    # bf16 weights for the MXU; biases stay f32 (added onto the f32 accumulator).
    w1b = w1.astype(jnp.bfloat16)
    w2b = w2.astype(jnp.bfloat16)
    b1f = b1.astype(jnp.float32).reshape(1, H)
    b2f = b2.astype(jnp.float32).reshape(1, E)

    cost = pl.CostEstimate(
        flops=2 * M_pad * D * H + 2 * M_pad * H * E,
        transcendentals=0,
        bytes_accessed=(
            3 * B * D * 4          # activations (f32)
            + (D * H + H * E) * 2  # bf16 weights
            + (H + E) * 4          # f32 biases
            + M_pad * E * 4        # f32 output slab
        ),
    )

    out = pl.pallas_call(
        _triplet_embed_kernel,
        out_shape=jax.ShapeDtypeStruct((M_pad, E), jnp.float32),
        grid_spec=pltpu.PrefetchScalarGridSpec(
            num_scalar_prefetch=0,
            grid=(1,),  # triplet axis folded into the batch: one fused pass
            in_specs=[
                pl.BlockSpec((B, D), lambda i: (0, 0)),   # x1
                pl.BlockSpec((B, D), lambda i: (0, 0)),   # x2
                pl.BlockSpec((B, D), lambda i: (0, 0)),   # x3
                pl.BlockSpec((D, H), lambda i: (0, 0)),   # w1 (bf16)
                pl.BlockSpec((1, H), lambda i: (0, 0)),   # b1
                pl.BlockSpec((H, E), lambda i: (0, 0)),   # w2 (bf16)
                pl.BlockSpec((1, E), lambda i: (0, 0)),   # b2
            ],
            out_specs=pl.BlockSpec((M_pad, E), lambda i: (0, 0)),
            scratch_shapes=[pltpu.VMEM((M_pad, D), jnp.float32)],
        ),
        compiler_params=pltpu.CompilerParams(
            dimension_semantics=("arbitrary",),
        ),
        cost_estimate=cost,
    )(x1, x2, x3, w1b, b1f, w2b, b2f)

    # Cheap host-side row slices back into the three embeddings.
    return out[0:B], out[B : 2 * B], out[2 * B : 3 * B]


if __name__ == "__main__":
    # Small shapes consistent with the module: NCHW images.
    B, C, Himg, Wimg = 2, 4, 16, 16
    D = C * Himg * Wimg          # 1024
    Hdim = 128                   # hidden width of the embedding MLP
    Edim = 128                   # embedding dimension

    key = jax.random.PRNGKey(0)
    k1, k2, k3, kw1, kb1, kw2, kb2 = jax.random.split(key, 7)

    i1 = jax.random.normal(k1, (B, C, Himg, Wimg), dtype=jnp.float32)
    i2 = jax.random.normal(k2, (B, C, Himg, Wimg), dtype=jnp.float32)
    i3 = jax.random.normal(k3, (B, C, Himg, Wimg), dtype=jnp.float32)

    # Deterministic synthetic parameters for the shared embedding net.
    w1 = jax.random.normal(kw1, (D, Hdim), dtype=jnp.float32) * (1.0 / (D ** 0.5))
    b1 = jax.random.normal(kb1, (1, Hdim), dtype=jnp.float32) * 0.01
    w2 = jax.random.normal(kw2, (Hdim, Edim), dtype=jnp.float32) * (1.0 / (Hdim ** 0.5))
    b2 = jax.random.normal(kb2, (1, Edim), dtype=jnp.float32) * 0.01

    E1, E2, E3 = triplet_net(i1, i2, i3, w1, b1, w2, b2)
    jax.block_until_ready((E1, E2, E3))

    # Pure-JAX reference with the same bf16 operand / f32 accumulate recipe as
    # the kernel (shared weights applied to each input).
    def ref_embed(x):
        xf = x.reshape(B, D).astype(jnp.bfloat16)
        h = jnp.dot(xf, w1.astype(jnp.bfloat16), preferred_element_type=jnp.float32) + b1
        h = jnp.maximum(h, 0.0).astype(jnp.bfloat16)
        return jnp.dot(h, w2.astype(jnp.bfloat16), preferred_element_type=jnp.float32) + b2

    refs = (ref_embed(i1), ref_embed(i2), ref_embed(i3))
    for got, ref in zip((E1, E2, E3), refs):
        assert got.shape == (B, Edim)
        assert jnp.allclose(got, ref, atol=1e-2, rtol=1e-2)

    print("KERNEL_OK")
</pallas_src>

<mosaic_0001>
module attributes {stable_mosaic.version = 11 : i64} {
  func.func @_triplet_embed_kernel(%arg0: i32, %arg1: memref<2x1024xf32, #tpu.memory_space<vmem>>, %arg2: memref<2x1024xf32, #tpu.memory_space<vmem>>, %arg3: memref<2x1024xf32, #tpu.memory_space<vmem>>, %arg4: memref<1024x128xbf16, #tpu.memory_space<vmem>>, %arg5: memref<1x128xf32, #tpu.memory_space<vmem>>, %arg6: memref<128x128xbf16, #tpu.memory_space<vmem>>, %arg7: memref<1x128xf32, #tpu.memory_space<vmem>>, %arg8: memref<8x128xf32, #tpu.memory_space<vmem>>, %arg9: memref<8x1024xf32, #tpu.memory_space<vmem>>) attributes {dimension_semantics = [#tpu.dimension_semantics<arbitrary>], iteration_bounds = array<i64: 1>, scalar_prefetch = 0 : i64, scratch_operands = 1 : i64, tpu.core_type = #tpu.core_type<tc>, window_params = [{pipeline_mode = #tpu.pipeline_mode<synchronous>, transform_indices = @transform_0, window_bounds = array<i64: 2, 1024>}, {pipeline_mode = #tpu.pipeline_mode<synchronous>, transform_indices = @transform_1, window_bounds = array<i64: 2, 1024>}, {pipeline_mode = #tpu.pipeline_mode<synchronous>, transform_indices = @transform_2, window_bounds = array<i64: 2, 1024>}, {pipeline_mode = #tpu.pipeline_mode<synchronous>, transform_indices = @transform_3, window_bounds = array<i64: 1024, 128>}, {pipeline_mode = #tpu.pipeline_mode<synchronous>, transform_indices = @transform_4, window_bounds = array<i64: 1, 128>}, {pipeline_mode = #tpu.pipeline_mode<synchronous>, transform_indices = @transform_5, window_bounds = array<i64: 128, 128>}, {pipeline_mode = #tpu.pipeline_mode<synchronous>, transform_indices = @transform_6, window_bounds = array<i64: 1, 128>}, {pipeline_mode = #tpu.pipeline_mode<synchronous>, transform_indices = @transform_7, window_bounds = array<i64: 8, 128>}]} {
    %cst = arith.constant 0.000000e+00 : f32
    %0 = vector.broadcast %cst : f32 to vector<8x1024xf32>
    %c0 = arith.constant 0 : index
    %c0_0 = arith.constant 0 : index
    %1 = vector.load %arg9[%c0, %c0_0] : memref<8x1024xf32, #tpu.memory_space<vmem>>, vector<8x1024xf32>
    tpu.vector_store %arg9[%c0, %c0_0], %0 {strides = array<i32>} : memref<8x1024xf32, #tpu.memory_space<vmem>>, vector<8x1024xf32>,
    %c0_1 = arith.constant 0 : index
    %c0_2 = arith.constant 0 : index
    %2 = vector.load %arg1[%c0_1, %c0_2] : memref<2x1024xf32, #tpu.memory_space<vmem>>, vector<2x1024xf32>
    %c0_3 = arith.constant 0 : index
    %c0_4 = arith.constant 0 : index
    %3 = vector.load %arg9[%c0_3, %c0_4] : memref<8x1024xf32, #tpu.memory_space<vmem>>, vector<2x1024xf32>
    tpu.vector_store %arg9[%c0_3, %c0_4], %2 {strides = array<i32>} : memref<8x1024xf32, #tpu.memory_space<vmem>>, vector<2x1024xf32>,
    %c0_5 = arith.constant 0 : index
    %c0_6 = arith.constant 0 : index
    %4 = vector.load %arg2[%c0_5, %c0_6] : memref<2x1024xf32, #tpu.memory_space<vmem>>, vector<2x1024xf32>
    %c2 = arith.constant 2 : index
    %c0_7 = arith.constant 0 : index
    %5 = vector.load %arg9[%c2, %c0_7] : memref<8x1024xf32, #tpu.memory_space<vmem>>, vector<2x1024xf32>
    tpu.vector_store %arg9[%c2, %c0_7], %4 {strides = array<i32>} : memref<8x1024xf32, #tpu.memory_space<vmem>>, vector<2x1024xf32>,
    %c0_8 = arith.constant 0 : index
    %c0_9 = arith.constant 0 : index
    %6 = vector.load %arg3[%c0_8, %c0_9] : memref<2x1024xf32, #tpu.memory_space<vmem>>, vector<2x1024xf32>
    %c4 = arith.constant 4 : index
    %c0_10 = arith.constant 0 : index
    %7 = vector.load %arg9[%c4, %c0_10] : memref<8x1024xf32, #tpu.memory_space<vmem>>, vector<2x1024xf32>
    tpu.vector_store %arg9[%c4, %c0_10], %6 {strides = array<i32>} : memref<8x1024xf32, #tpu.memory_space<vmem>>, vector<2x1024xf32>,
    %c0_11 = arith.constant 0 : index
    %c0_12 = arith.constant 0 : index
    %8 = vector.load %arg9[%c0_11, %c0_12] : memref<8x1024xf32, #tpu.memory_space<vmem>>, vector<8x1024xf32>
    %9 = arith.truncf %8 : vector<8x1024xf32> to vector<8x1024xbf16>
    %c0_13 = arith.constant 0 : index
    %c0_14 = arith.constant 0 : index
    %10 = vector.load %arg4[%c0_13, %c0_14] : memref<1024x128xbf16, #tpu.memory_space<vmem>>, vector<1024x128xbf16>
    %cst_15 = arith.constant dense<0.000000e+00> : vector<8x128xf32>
    %11 = tpu.matmul %9, %10, %cst_15 {dimension_numbers = #tpu.dot_dimension_numbers<[1], [0], [0], [1], [0, 0, 1, 1], [], []>} : vector<8x1024xbf16>, vector<1024x128xbf16>, vector<8x128xf32> -> vector<8x128xf32>
    %c0_16 = arith.constant 0 : index
    %c0_17 = arith.constant 0 : index
    %12 = vector.load %arg5[%c0_16, %c0_17] : memref<1x128xf32, #tpu.memory_space<vmem>>, vector<1x128xf32>
    %13 = vector.broadcast %12 : vector<1x128xf32> to vector<8x128xf32>
    %14 = arith.addf %11, %13 : vector<8x128xf32>
    %cst_18 = arith.constant 0.000000e+00 : f32
    %15 = vector.broadcast %cst_18 : f32 to vector<8x128xf32>
    %16 = arith.maximumf %14, %15 : vector<8x128xf32>
    %17 = arith.truncf %16 : vector<8x128xf32> to vector<8x128xbf16>
    %c0_19 = arith.constant 0 : index
    %c0_20 = arith.constant 0 : index
    %18 = vector.load %arg6[%c0_19, %c0_20] : memref<128x128xbf16, #tpu.memory_space<vmem>>, vector<128x128xbf16>
    %cst_21 = arith.constant dense<0.000000e+00> : vector<8x128xf32>
    %19 = tpu.matmul %17, %18, %cst_21 {dimension_numbers = #tpu.dot_dimension_numbers<[1], [0], [0], [1], [0, 0, 1, 1], [], []>} : vector<8x128xbf16>, vector<128x128xbf16>, vector<8x128xf32> -> vector<8x128xf32>
    %c0_22 = arith.constant 0 : index
    %c0_23 = arith.constant 0 : index
    %20 = vector.load %arg7[%c0_22, %c0_23] : memref<1x128xf32, #tpu.memory_space<vmem>>, vector<1x128xf32>
    %21 = vector.broadcast %20 : vector<1x128xf32> to vector<8x128xf32>
    %22 = arith.addf %19, %21 : vector<8x128xf32>
    %c0_24 = arith.constant 0 : index
    %c0_25 = arith.constant 0 : index
    %23 = vector.load %arg8[%c0_24, %c0_25] : memref<8x128xf32, #tpu.memory_space<vmem>>, vector<8x128xf32>
    tpu.vector_store %arg8[%c0_24, %c0_25], %22 {strides = array<i32>} : memref<8x128xf32, #tpu.memory_space<vmem>>, vector<8x128xf32>,
    return
  }
  func.func @transform_0(%arg0: i32) -> (i32, i32) {
    %c0_i32 = arith.constant 0 : i32
    %c0_i32_0 = arith.constant 0 : i32
    %c0_i32_1 = arith.constant 0 : i32
    return %c0_i32, %c0_i32_0 : i32, i32
  }
  func.func @transform_1(%arg0: i32) -> (i32, i32) {
    %c0_i32 = arith.constant 0 : i32
    %c0_i32_0 = arith.constant 0 : i32
    %c0_i32_1 = arith.constant 0 : i32
    return %c0_i32, %c0_i32_0 : i32, i32
  }
  func.func @transform_2(%arg0: i32) -> (i32, i32) {
    %c0_i32 = arith.constant 0 : i32
    %c0_i32_0 = arith.constant 0 : i32
    %c0_i32_1 = arith.constant 0 : i32
    return %c0_i32, %c0_i32_0 : i32, i32
  }
  func.func @transform_3(%arg0: i32) -> (i32, i32) {
    %c0_i32 = arith.constant 0 : i32
    %c0_i32_0 = arith.constant 0 : i32
    %c0_i32_1 = arith.constant 0 : i32
    return %c0_i32, %c0_i32_0 : i32, i32
  }
  func.func @transform_4(%arg0: i32) -> (i32, i32) {
    %c0_i32 = arith.constant 0 : i32
    %c0_i32_0 = arith.constant 0 : i32
    %c0_i32_1 = arith.constant 0 : i32
    return %c0_i32, %c0_i32_0 : i32, i32
  }
  func.func @transform_5(%arg0: i32) -> (i32, i32) {
    %c0_i32 = arith.constant 0 : i32
    %c0_i32_0 = arith.constant 0 : i32
    %c0_i32_1 = arith.constant 0 : i32
    return %c0_i32, %c0_i32_0 : i32, i32
  }
  func.func @transform_6(%arg0: i32) -> (i32, i32) {
    %c0_i32 = arith.constant 0 : i32
    %c0_i32_0 = arith.constant 0 : i32
    %c0_i32_1 = arith.constant 0 : i32
    return %c0_i32, %c0_i32_0 : i32, i32
  }
  func.func @transform_7(%arg0: i32) -> (i32, i32) {
    %c0_i32 = arith.constant 0 : i32
    %c0_i32_0 = arith.constant 0 : i32
    %c0_i32_1 = arith.constant 0 : i32
    return %c0_i32, %c0_i32_0 : i32, i32
  }
}

</mosaic_0001>

<bundles_post_ra>
// kernel: tpu_custom_call.1
= control target key start
LH: loop header
LB: loop body
LE: loop exit
PB: predicated region body
PF: predicated region fallthrough
CT: control target
= control target key end

     0   :  { %12 = vsyncpa [#allocation4], 0  ;;  %s1687_s0 = inlined_call_operand.hbm [shape: f32[2,1024], index: 0, kind: input, shape index: {}]   ;;  %s1688_s1 = inlined_call_operand.hbm [shape: f32[2,1024], index: 1, kind: input, shape index: {}]   ;;  %s1689_s2 = inlined_call_operand.hbm [shape: f32[2,1024], index: 2, kind: input, shape index: {}]   ;;  %s1690_s3 = inlined_call_operand.hbm [shape: bf16[1024,128], index: 3, kind: input, shape index: {}]   ;;  %s1691_s4 = inlined_call_operand.vmem [shape: f32[1,128], index: 4, kind: input, shape index: {}]   ;;  %s1692_s5 = inlined_call_operand.hbm [shape: bf16[128,128], index: 5, kind: input, shape index: {}]   ;;  %s1693_s6 = inlined_call_operand.vmem [shape: f32[1,128], index: 6, kind: input, shape index: {}]   ;;  %s1694_s7 = inlined_call_operand.hbm [shape: f32[8,128], index: 7, kind: output, shape index: {}]  }
   0x1   :  { %13 = vsyncpa [#allocation7], 0 }
   0x2   :  { %14 = vsyncpa [#allocation10], 0 }
   0x3   :  { %15 = vsyncpa [#allocation5], 0  ;;  %s1514_s24 = smov [#allocation6]   ;;  %s1515_s26 = smov [#allocation9]  }
   0x4   :  { %s32_s25 = sshll.u32 %s1514_s24, 4  ;;  %s51_s27 = sshll.u32 %s1515_s26, 4  ;;  %s33_s25 = int_to_ptr.vmem [resolvable:$true] %s32_s25  ;;  %s1565_s27 = int_to_ptr.vmem [resolvable:$true] %s51_s27 }
   0x5   :  { %s1374_s30 = scalar_lea.hbm %s1688_s1, 256 }
   0x6   :  { %p1375_p0 = scmp.ne.s32.totalorder %s1688_s1, %s1374_s30  ;;  %p1378_p1 = scmp.lt.u32.totalorder %s1374_s30, %s1688_s1 }
   0x8   :  { %p1380_p2 = pnand %p1378_p1, %p1375_p0 }
   0xa   :  { %1383 = shalt.err (!%p1380_p2)
}
   0xb   :  { %s1384_s12 = scalar_lea.vmem %s33_s25, 256  ;;  %p1389_p4 = scmp.lt.s32.totalorder %s33_s25, %s33_s25 }
   0xc   :  { %p1385_p3 = scmp.ne.s32.totalorder %s33_s25, %s1384_s12  ;;  %p1390_p5 = scmp.lt.s32.totalorder %s1384_s12, %s1384_s12 }
   0xe   :  { %p1391_p6 = por %p1390_p5, %p1389_p4 }
  0x10   :  { %p1392_p7 = pnand %p1391_p6, %p1385_p3 }
  0x12   :  { %1395 = shalt.err (!%p1392_p7)
}
  0x13   :  { %35 = dma.hbm_to_vmem [thread:$0]  %s1688_s1, 256, %s33_s25, [#allocation7]  }
  0x14   :  { %s1396_s17 = scalar_lea.hbm %s1690_s3, 8192 }
  0x15   :  { %p1397_p8 = scmp.ne.s32.totalorder %s1690_s3, %s1396_s17  ;;  %p1400_p9 = scmp.lt.u32.totalorder %s1396_s17, %s1690_s3 }
  0x17   :  { %p1402_p10 = pnand %p1400_p9, %p1397_p8 }
  0x19   :  { %1405 = shalt.err (!%p1402_p10)
}
  0x1a   :  { %s1406_s22 = scalar_lea.vmem %s1565_s27, 8192  ;;  %p1411_p12 = scmp.lt.s32.totalorder %s1565_s27, %s1565_s27 }
  0x1b   :  { %p1407_p11 = scmp.ne.s32.totalorder %s1565_s27, %s1406_s22  ;;  %p1412_p13 = scmp.lt.s32.totalorder %s1406_s22, %s1406_s22 }
  0x1d   :  { %p1413_p0 = por %p1412_p13, %p1411_p12 }
  0x1f   :  { %p1414_p1 = pnand %p1413_p0, %p1407_p11 }
  0x21   :  { %1417 = shalt.err (!%p1414_p1)
}
  0x22   :  { %s1516_s1 = smov 64   ;;  %s1517_s23 = smov 4  }
  0x23   :  { %57 = dma.hbm_to_vmem [thread:$0]  %s1690_s3, 8192, %s1565_s27, [#allocation10], %s1516_s1, %s1516_s1, %s1517_s23  }
  0x24   :  { %s1518_s26 = smov [#allocation3]   ;;  %s1519_s29 = smov [#allocation8]  }
  0x25   :  { %s22_s28 = sshll.u32 %s1518_s26, 4  ;;  %s42_s30 = sshll.u32 %s1519_s29, 4  ;;  %s23_s28 = int_to_ptr.vmem [resolvable:$true] %s22_s28  ;;  %s43_s30 = int_to_ptr.vmem [resolvable:$true] %s42_s30 }
  0x26   :  { %s1418_s10 = scalar_lea.hbm %s1687_s0, 256 }
  0x27   :  { %p1419_p2 = scmp.ne.s32.totalorder %s1687_s0, %s1418_s10  ;;  %p1422_p3 = scmp.lt.u32.totalorder %s1418_s10, %s1687_s0 }
  0x29   :  { %p1424_p4 = pnand %p1422_p3, %p1419_p2 }
  0x2b   :  { %1427 = shalt.err (!%p1424_p4)
}
  0x2c   :  { %s1428_s3 = scalar_lea.vmem %s23_s28, 256  ;;  %p1433_p6 = scmp.lt.s32.totalorder %s23_s28, %s23_s28 }
  0x2d   :  { %p1429_p5 = scmp.ne.s32.totalorder %s23_s28, %s1428_s3  ;;  %p1434_p7 = scmp.lt.s32.totalorder %s1428_s3, %s1428_s3 }
  0x2f   :  { %p1435_p8 = por %p1434_p7, %p1433_p6 }
  0x31   :  { %p1436_p9 = pnand %p1435_p8, %p1429_p5 }
  0x33   :  { %1439 = shalt.err (!%p1436_p9)
}
  0x34   :  { %25 = dma.hbm_to_vmem [thread:$0]  %s1687_s0, 256, %s23_s28, [#allocation4]  }
  0x35   :  { %s1440_s18 = scalar_lea.hbm %s1689_s2, 256 }
  0x36   :  { %p1441_p10 = scmp.ne.s32.totalorder %s1689_s2, %s1440_s18  ;;  %p1444_p11 = scmp.lt.u32.totalorder %s1440_s18, %s1689_s2 }
  0x38   :  { %p1446_p12 = pnand %p1444_p11, %p1441_p10 }
  0x3a   :  { %1449 = shalt.err (!%p1446_p12)
}
  0x3b   :  { %s1450_s24 = scalar_lea.vmem %s43_s30, 256  ;;  %p1455_p0 = scmp.lt.s32.totalorder %s43_s30, %s43_s30 }
  0x3c   :  { %p1451_p13 = scmp.ne.s32.totalorder %s43_s30, %s1450_s24  ;;  %p1456_p1 = scmp.lt.s32.totalorder %s1450_s24, %s1450_s24 }
  0x3e   :  { %p1457_p2 = por %p1456_p1, %p1455_p0 }
  0x40   :  { %p1458_p3 = pnand %p1457_p2, %p1451_p13 }
  0x42   :  { %1461 = shalt.err (!%p1458_p3)
}
  0x43   :  { %45 = dma.hbm_to_vmem [thread:$0]  %s1689_s2, 256, %s43_s30, [#allocation7]  }
  0x44   :  { %s1520_s26 = smov [#allocation11]   ;;  %s1462_s9 = scalar_lea.hbm %s1692_s5, 1024 }
  0x45   :  { %s65_s28 = sshll.u32 %s1520_s26, 4  ;;  %p1463_p4 = scmp.ne.s32.totalorder %s1692_s5, %s1462_s9  ;;  %s66_s28 = int_to_ptr.vmem [resolvable:$true] %s65_s28 }
  0x46   :  { %p1466_p5 = scmp.lt.u32.totalorder %s1462_s9, %s1692_s5 }
  0x48   :  { %p1468_p6 = pnand %p1466_p5, %p1463_p4 }
  0x4a   :  { %1471 = shalt.err (!%p1468_p6)
}
  0x4b   :  { %s1472_s14 = scalar_lea.vmem %s66_s28, 1024  ;;  %p1477_p8 = scmp.lt.s32.totalorder %s66_s28, %s66_s28 }
  0x4c   :  { %p1473_p7 = scmp.ne.s32.totalorder %s66_s28, %s1472_s14  ;;  %p1478_p9 = scmp.lt.s32.totalorder %s1472_s14, %s1472_s14 }
  0x4e   :  { %p1479_p10 = por %p1478_p9, %p1477_p8 }
  0x50   :  { %p1480_p11 = pnand %p1479_p10, %p1473_p7 }
  0x52   :  { %1483 = shalt.err (!%p1480_p11)
}
  0x53   :  { %71 = dma.hbm_to_vmem [thread:$0]  %s1692_s5, 1024, %s66_s28, [#allocation10], %s1516_s1, %s1516_s1, %s1517_s23  }
  0x54   :  { %1506 = dma.done.wait [#allocation4], 256  }
  0x55   :  { %1507 = vsyncadd [#allocation4], 4294967040 }
  0x56   :  { %1508 = dma.done.wait [#allocation7], 512  }
  0x57   :  { %1509 = vsyncadd [#allocation7], 4294966784 }
  0x58   :  { %1510 = dma.done.wait [#allocation10], 9216  }
  0x59   :  { %1511 = vsyncadd [#allocation10], 4294958080  ;;  %v1521_v0 = vmov 0.0   ;;  %v1300_v1 = vld [vmem:[#allocation9 + $0x40] sm:$0xff]   ;;  %v1304_v5 = vld [vmem:[#allocation9 + $0x48] sm:$0xff]   ;;  %v106_v25 = vlaneseq  ;;  %vm1523_vm0 = vmmov 0  }
  0x5a   :  { %91 = vst [vmem:[#allocation2 + $0x8] sm:$0xff] %v1521_v0  ;;  %90 = vst [vmem:[#allocation2] sm:$0xff] %v1521_v0  ;;  %v1301_v2 = vld [vmem:[#allocation9 + $0xc0] sm:$0xff]   ;;  %1172 = vmatprep.subr.bf16.mxu0 %v1300_v1  ;;  %v1305_v6 = vld [vmem:[#allocation9 + $0xc8] sm:$0xff]   ;;  %v1522_v23 = vmov 1983009808  }
  0x5b   :  { %92 = vst [vmem:[#allocation2 + $0x10] sm:$0xff] %v1521_v0  ;;  %93 = vst [vmem:[#allocation2 + $0x18] sm:$0xff] %v1521_v0  ;;  %v1302_v3 = vld [vmem:[#allocation9] sm:$0xff]   ;;  %1194 = vmatprep.subr.bf16.mxu1 %v1301_v2  ;;  %v1306_v7 = vld [vmem:[#allocation9 + $0x8] sm:$0xff]   ;;  %v104_v24 = vunpack.c.l.s4 %v1522_v23  ;;  %v107_v31 = vshrl.u32 %v106_v25, 7  ;;  %s1524_s3 = smov [#allocation12]  }
  0x5c   :  { %94 = vst [vmem:[#allocation2 + $0x20] sm:$0xff] %v1521_v0  ;;  %95 = vst [vmem:[#allocation2 + $0x28] sm:$0xff] %v1521_v0  ;;  %v1303_v4 = vld [vmem:[#allocation9 + $0x80] sm:$0xff]   ;;  %1173 = vmatpush3.bf16.msra.mxu0 %v1302_v3  ;;  %v1307_v8 = vld [vmem:[#allocation9 + $0x88] sm:$0xff]   ;;  %s1075_s27 = sshll.u32 %s1524_s3, 4  ;;  %s1076_s27 = int_to_ptr.vmem [resolvable:$true] %s1075_s27 }
  0x5d   :  { %96 = vst [vmem:[#allocation2 + $0x30] sm:$0xff] %v1521_v0  ;;  %97 = vst [vmem:[#allocation2 + $0x38] sm:$0xff] %v1521_v0  ;;  %1195 = vmatpush3.bf16.msra.mxu1 %v1303_v4  ;;  %1174 = vmatprep.subr.bf16.mxu0 %v1304_v5  ;;  %v1308_v9 = vld [vmem:[#allocation9 + $0x50] sm:$0xff]   ;;  %v1312_v13 = vld [vmem:[#allocation9 + $0x58] sm:$0xff]   ;;  %v105_v30 = vunpack.c.0.s8 %v104_v24  ;;  %s1484_s15 = scalar_lea.vmem %s1076_s27, 128  ;;  %p1489_p13 = scmp.lt.s32.totalorder %s1076_s27, %s1076_s27 }
  0x5e   :  { %1196 = vmatprep.subr.bf16.mxu1 %v1305_v6  ;;  %v1309_v10 = vld [vmem:[#allocation9 + $0xd0] sm:$0xff]   ;;  %v1313_v14 = vld [vmem:[#allocation9 + $0xd8] sm:$0xff]   ;;  %v1316_v17 = vld [vmem:[#allocation9 + $0x60] sm:$0xff]   ;;  %p1485_p12 = scmp.ne.s32.totalorder %s1076_s27, %s1484_s15  ;;  %p1490_p0 = scmp.lt.s32.totalorder %s1484_s15, %s1484_s15 }
  0x5f   :  { %v1310_v11 = vld [vmem:[#allocation9 + $0x10] sm:$0xff]   ;;  %v1314_v15 = vld [vmem:[#allocation9 + $0x18] sm:$0xff]   ;;  %v1317_v18 = vld [vmem:[#allocation9 + $0xe0] sm:$0xff]   ;;  %v1646_v36 = vsub.s32 %v105_v30, %v107_v31 }
  0x60   :  { %1175 = vmatpush3.bf16.msra.mxu0 %v1306_v7  ;;  %v1311_v12 = vld [vmem:[#allocation9 + $0x90] sm:$0xff]   ;;  %v1315_v16 = vld [vmem:[#allocation9 + $0x98] sm:$0xff]   ;;  %v1318_v19 = vld [vmem:[#allocation9 + $0x20] sm:$0xff]   ;;  %p1491_p1 = por %p1490_p0, %p1489_p13 }
  0x61   :  { %1197 = vmatpush3.bf16.msra.mxu1 %v1307_v8  ;;  %1176 = vmatprep.subr.bf16.mxu0 %v1308_v9  ;;  %v1319_v20 = vld [vmem:[#allocation9 + $0xa0] sm:$0xff]   ;;  %v1320_v21 = vld [vmem:[#allocation9 + $0x68] sm:$0xff]   ;;  %v1324_v28 = vld [vmem:[#allocation9 + $0x70] sm:$0xff]  }
  0x62   :  { %1198 = vmatprep.subr.bf16.mxu1 %v1309_v10  ;;  %v1321_v22 = vld [vmem:[#allocation9 + $0xe8] sm:$0xff]   ;;  %v1325_v29 = vld [vmem:[#allocation9 + $0xf0] sm:$0xff]   ;;  %v1328_v34 = vld [vmem:[#allocation9 + $0x78] sm:$0xff]   ;;  %p1492_p2 = pnand %p1491_p1, %p1485_p12 }
  0x63   :  { %v1322_v26 = vld [vmem:[#allocation9 + $0x28] sm:$0xff]   ;;  %v1326_v32 = vld [vmem:[#allocation9 + $0x30] sm:$0xff]   ;;  %v1329_v35 = vld [vmem:[#allocation9 + $0xf8] sm:$0xff]  }
  0x64   :  { %1177 = vmatpush3.bf16.msra.mxu0 %v1310_v11  ;;  %v1323_v27 = vld [vmem:[#allocation9 + $0xa8] sm:$0xff]   ;;  %v1327_v33 = vld [vmem:[#allocation9 + $0xb0] sm:$0xff]   ;;  %v1330_v37 = vld [vmem:[#allocation9 + $0x38] sm:$0xff]  }
  0x65   :  { %1199 = vmatpush3.bf16.msra.mxu1 %v1311_v12  ;;  %1178 = vmatprep.subr.bf16.mxu0 %v1312_v13  ;;  %v1331_v38 = vld [vmem:[#allocation9 + $0xb8] sm:$0xff]   ;;  %v98_v39 = vld [vmem:[#allocation3] sm:$0xff]  ;;  %v152_v40 = vld [vmem:[#allocation6] sm:$0xff] }
  0x66   :  { %1200 = vmatprep.subr.bf16.mxu1 %v1313_v14  ;;  %v206_v41 = vld [vmem:[#allocation8] sm:$0xff]  ;;  %v109_v42 = vrot.slane %v98_v39, %v1646_v36  ;;  %v156_v43 = vcombine.low %v152_v40, %v152_v40  ;;  %v102_v45 = vcombine.high %v98_v39, %v98_v39  ;;  %1086 = vst.sshfl [vmem:[#allocation2] sm:$0x3 pattern:$0x76325410] %v98_v39  ;;  %v1333_v46 = vld [vmem:[#allocation9 + $0x140] sm:$0xff]  }
  0x67   :  { %v217_v44 = vrot.slane %v206_v41, %v1646_v36  ;;  %1094 = vst.sshfl [vmem:[#allocation2 + $0x8] sm:$0xc pattern:$0x76325410] %v206_v41  ;;  %v170_v47 = vrot.slane %v152_v40, %v1646_v36  ;;  %v210_v48 = vcombine.high %v206_v41, %v206_v41  ;;  %v1334_v49 = vld [vmem:[#allocation9 + $0x1c0] sm:$0xff]   ;;  %v1337_v2 = vld [vmem:[#allocation9 + $0x148] sm:$0xff]  }
  0x68   :  { %1179 = vmatpush3.bf16.msra.mxu0 %v1314_v15  ;;  %1091 = vst.sshfl [vmem:[#allocation2 + $0x10] sm:$0x30 pattern:$0x76325410] %v152_v40  ;;  %v117_v50 = vcombine.high %v109_v42, %v109_v42  ;;  %v163_v51 = vrot.slane %v156_v43, %v1646_v36  ;;  %v116_v53 = vrot.slane %v102_v45, %v1646_v36  ;;  %v1335_v60 = vld [vmem:[#allocation9 + $0x100] sm:$0xff]   ;;  %v1338_v7 = vld [vmem:[#allocation9 + $0x1c8] sm:$0xff]  }
  0x69   :  { %1201 = vmatpush3.bf16.msra.mxu1 %v1315_v16  ;;  %1180 = vmatprep.subr.bf16.mxu0 %v1316_v17  ;;  %v225_v52 = vcombine.low %v217_v44, %v217_v44  ;;  %1087 = vst.sshfl [vmem:[#allocation2 + $0x10] sm:$0x3 pattern:$0x76325410] %v102_v45  ;;  %v172_v54 = vcombine.high %v170_v47, %v170_v47  ;;  %v1336_v61 = vld [vmem:[#allocation9 + $0x180] sm:$0xff]   ;;  %v1339_v8 = vld [vmem:[#allocation9 + $0x108] sm:$0xff]  }
  0x6a   :  { %1202 = vmatprep.subr.bf16.mxu1 %v1317_v18  ;;  %1090 = vst.sshfl [vmem:[#allocation2] sm:$0x30 pattern:$0x76325410] %v156_v43  ;;  %v224_v55 = vrot.slane %v210_v48, %v1646_v36  ;;  %145 = vst [vmem:[#allocation2 + $0x8] sm:$0x3] %v117_v50  ;;  %v171_v56 = vcombine.high %v163_v51, %v163_v51  ;;  %v118_v57 = vcombine.high %v116_v53, %v116_v53 }
  0x6b   :  { %1095 = vst.sshfl [vmem:[#allocation2 + $0x18] sm:$0xc pattern:$0x76325410] %v210_v48  ;;  %252 = vst [vmem:[#allocation2] sm:$0x30] %v225_v52 }
  0x6c   :  { %1181 = vmatpush3.bf16.msra.mxu0 %v1318_v19  ;;  %201 = vst [vmem:[#allocation2 + $0x18] sm:$0xc] %v172_v54  ;;  %v226_v58 = vcombine.low %v224_v55, %v224_v55  ;;  %199 = vst [vmem:[#allocation2 + $0x8] sm:$0xc] %v171_v56  ;;  %v1340_v9 = vld [vmem:[#allocation9 + $0x188] sm:$0xff]   ;;  %v1341_v10 = vld [vmem:[#allocation9 + $0x150] sm:$0xff]  }
  0x6d   :  { %1203 = vmatpush3.bf16.msra.mxu1 %v1319_v20  ;;  %1182 = vmatprep.subr.bf16.mxu0 %v1320_v21  ;;  %147 = vst [vmem:[#allocation2 + $0x18] sm:$0x3] %v118_v57  ;;  %v1342_v11 = vld [vmem:[#allocation9 + $0x1d0] sm:$0xff]   ;;  %v1345_v14 = vld [vmem:[#allocation9 + $0x158] sm:$0xff]   ;;  %v1349_v18 = vld [vmem:[#allocation9 + $0x160] sm:$0xff]  }
  0x6e   :  { %1204 = vmatprep.subr.bf16.mxu1 %v1321_v22  ;;  %254 = vst [vmem:[#allocation2 + $0x10] sm:$0x30] %v226_v58  ;;  %v1343_v12 = vld [vmem:[#allocation9 + $0x110] sm:$0xff]   ;;  %v1346_v15 = vld [vmem:[#allocation9 + $0x1d8] sm:$0xff]   ;;  %v1350_v19 = vld [vmem:[#allocation9 + $0x1e0] sm:$0xff]  }
  0x6f   :  { %v1344_v13 = vld [vmem:[#allocation9 + $0x190] sm:$0xff]   ;;  %v1347_v16 = vld [vmem:[#allocation9 + $0x118] sm:$0xff]   ;;  %v1351_v20 = vld [vmem:[#allocation9 + $0x120] sm:$0xff]  }
  0x70   :  { %1183 = vmatpush3.bf16.msra.mxu0 %v1322_v26  ;;  %v1348_v17 = vld [vmem:[#allocation9 + $0x198] sm:$0xff]   ;;  %v1352_v21 = vld [vmem:[#allocation9 + $0x1a0] sm:$0xff]   ;;  %v1353_v22 = vld [vmem:[#allocation9 + $0x168] sm:$0xff]  }
  0x71   :  { %1205 = vmatpush3.bf16.msra.mxu1 %v1323_v27  ;;  %1184 = vmatprep.subr.bf16.mxu0 %v1324_v28  ;;  %v1354_v23 = vld [vmem:[#allocation9 + $0x1e8] sm:$0xff]   ;;  %v1357_v26 = vld [vmem:[#allocation9 + $0x170] sm:$0xff]   ;;  %v99_v28 = vld [vmem:[#allocation3 + $0x8] sm:$0xff] }
  0x72   :  { %1206 = vmatprep.subr.bf16.mxu1 %v1325_v29  ;;  %v260_v59 = vld [vmem:[#allocation2] sm:$0xff]  ;;  %v1355_v24 = vld [vmem:[#allocation9 + $0x128] sm:$0xff]   ;;  %v126_v30 = vrot.slane %v99_v28, %v1646_v36  ;;  %1088 = vst.sshfl [vmem:[#allocation2 + $0x20] sm:$0x3 pattern:$0x76325410] %v99_v28 }
  0x73   :  { %v261_v62 = vld [vmem:[#allocation2 + $0x8] sm:$0xff]  ;;  %v268_v1 = vpack.c.bf16 %v260_v59, %v260_v59  ;;  %v1356_v25 = vld [vmem:[#allocation9 + $0x1a8] sm:$0xff]   ;;  %v1358_v27 = vld [vmem:[#allocation9 + $0x1f0] sm:$0xff]  }
  0x74   :  { %1185 = vmatpush3.bf16.msra.mxu0 %v1326_v32  ;;  %v263_v63 = vld [vmem:[#allocation2 + $0x18] sm:$0xff]  ;;  %v269_v3 = vpack.c.bf16 %v261_v62, %v261_v62  ;;  %v207_v32 = vld [vmem:[#allocation8 + $0x8] sm:$0xff]  ;;  %v1360_v39 = vld [vmem:[#allocation9 + $0x1b0] sm:$0xff]   ;;  %v134_v40 = vcombine.high %v126_v30, %v126_v30 }
  0x75   :  { %1207 = vmatpush3.bf16.msra.mxu1 %v1327_v33  ;;  %1186 = vmatprep.subr.bf16.mxu0 %v1328_v34  ;;  %v271_v4 = vpack.c.bf16 %v263_v63, %v263_v63  ;;  %v262_v5 = vld [vmem:[#allocation2 + $0x10] sm:$0xff]  ;;  %v153_v29 = vld [vmem:[#allocation6 + $0x8] sm:$0xff]  ;;  %v119_v33 = vcombine.high %v99_v28, %v99_v28  ;;  %v234_v34 = vrot.slane %v207_v32, %v1646_v36  ;;  %v1361_v43 = vld [vmem:[#allocation9 + $0x178] sm:$0xff]  }
  0x76   :  { %1208 = vmatprep.subr.bf16.mxu1 %v1329_v35  ;;  %v270_v6 = vpack.c.bf16 %v262_v5, %v262_v5  ;;  %827 = vmatprep.mubr.bf16.mxu0 %v269_v3  ;;  %v173_v31 = vcombine.low %v153_v29, %v153_v29  ;;  %1093 = vst.sshfl [vmem:[#allocation2 + $0x30] sm:$0x30 pattern:$0x76325410] %v153_v29  ;;  %149 = vst [vmem:[#allocation2 + $0x28] sm:$0x3] %v134_v40 }
  0x77   :  { %867 = vmatprep.mubr.bf16.mxu1 %v271_v4  ;;  %1096 = vst.sshfl [vmem:[#allocation2 + $0x28] sm:$0xc pattern:$0x76325410] %v207_v32  ;;  %v187_v35 = vrot.slane %v153_v29, %v1646_v36  ;;  %v133_v42 = vrot.slane %v119_v33, %v1646_v36  ;;  %v242_v44 = vcombine.low %v234_v34, %v234_v34  ;;  %v1363_v51 = vld [vmem:[#allocation9 + $0x138] sm:$0xff]   ;;  %v1368_v62 = vld [vmem:[#allocation11 + $0x10] sm:$0xff]  }
  0x78   :  { %1187 = vmatpush3.bf16.msra.mxu0 %v1330_v37  ;;  %v227_v37 = vcombine.high %v207_v32, %v207_v32  ;;  %v180_v41 = vrot.slane %v173_v31, %v1646_v36  ;;  %1092 = vst.sshfl [vmem:[#allocation2 + $0x20] sm:$0x30 pattern:$0x76325410] %v173_v31  ;;  %v1364_v52 = vld [vmem:[#allocation9 + $0x1b8] sm:$0xff]   ;;  %v1372_v3 = vld [vmem:[#allocation11 + $0x30] sm:$0xff]  }
  0x79   :  { %1209 = vmatpush3.bf16.msra.mxu1 %v1331_v38  ;;  %1216 = vmatprep.subr.bf16.mxu0 %v1333_v46  ;;  %v1359_v38 = vld [vmem:[#allocation9 + $0x130] sm:$0xff]   ;;  %1089 = vst.sshfl [vmem:[#allocation2 + $0x30] sm:$0x3 pattern:$0x76325410] %v119_v33  ;;  %v189_v45 = vcombine.high %v187_v35, %v187_v35  ;;  %v135_v48 = vcombine.high %v133_v42, %v133_v42  ;;  %v1369_v63 = vld [vmem:[#allocation11 + $0x18] sm:$0xff]  }
  0x7a   :  { %1238 = vmatprep.subr.bf16.mxu1 %v1334_v49  ;;  %v241_v46 = vrot.slane %v227_v37, %v1646_v36  ;;  %1097 = vst.sshfl [vmem:[#allocation2 + $0x38] sm:$0xc pattern:$0x76325410] %v227_v37  ;;  %v188_v47 = vcombine.high %v180_v41, %v180_v41  ;;  %v1362_v49 = vld [vmem:[#allocation9 + $0x1f8] sm:$0xff]  }
  0x7b   :  { %828 = vmatmul.mubr.bf16.vlgmr.msra.gmra.mrb[0].mxu0 %v268_v1  ;;  %256 = vst [vmem:[#allocation2 + $0x20] sm:$0x30] %v242_v44  ;;  %205 = vst [vmem:[#allocation2 + $0x38] sm:$0xc] %v189_v45  ;;  %v1370_v1 = vld [vmem:[#allocation11 + $0x20] sm:$0xff]   ;;  %v1373_v4 = vld [vmem:[#allocation11 + $0x38] sm:$0xff]  }
  0x7c   :  { %868 = vmatmul.mubr.bf16.vlgmr.msra.gmra.mrb[0].mxu1 %v270_v6  ;;  %1217 = vmatpush3.bf16.msra.mxu0 %v1335_v60  ;;  %v243_v50 = vcombine.low %v241_v46, %v241_v46  ;;  %203 = vst [vmem:[#allocation2 + $0x28] sm:$0xc] %v188_v47  ;;  %151 = vst [vmem:[#allocation2 + $0x38] sm:$0x3] %v135_v48  ;;  %v1366_v60 = vld [vmem:[#allocation11] sm:$0xff]  }
  0x7d   :  { %1239 = vmatpush3.bf16.msra.mxu1 %v1336_v61  ;;  %1218 = vmatprep.subr.bf16.mxu0 %v1337_v2  ;;  %v1367_v61 = vld [vmem:[#allocation11 + $0x8] sm:$0xff]   ;;  %v1163_v31 = vld [vmem:[%s1693_s6] ss:$0 sm:$0xff] }
  0x7e   :  { %1240 = vmatprep.subr.bf16.mxu1 %v1338_v7  ;;  %258 = vst [vmem:[#allocation2 + $0x30] sm:$0x30] %v243_v50  ;;  %v1371_v2 = vld [vmem:[#allocation11 + $0x28] sm:$0xff]   ;;  %v1098_v7 = vld [vmem:[%s1691_s4] ss:$0 sm:$0xff] }
  0x80   :  { %1219 = vmatpush3.bf16.msra.mxu0 %v1339_v8 }
  0x81   :  { %1241 = vmatpush3.bf16.msra.mxu1 %v1340_v9  ;;  %1220 = vmatprep.subr.bf16.mxu0 %v1341_v10 }
  0x82   :  { %1242 = vmatprep.subr.bf16.mxu1 %v1342_v11  ;;  %v264_v36 = vld [vmem:[#allocation2 + $0x20] sm:$0xff] }
  0x83   :  { %v265_v53 = vld [vmem:[#allocation2 + $0x28] sm:$0xff]  ;;  %v267_v54 = vld [vmem:[#allocation2 + $0x38] sm:$0xff]  ;;  %v272_v55 = vpack.c.bf16 %v264_v36, %v264_v36 }
  0x84   :  { %1221 = vmatpush3.bf16.msra.mxu0 %v1343_v12  ;;  %v273_v56 = vpack.c.bf16 %v265_v53, %v265_v53  ;;  %v275_v57 = vpack.c.bf16 %v267_v54, %v267_v54 }
  0x85   :  { %1243 = vmatpush3.bf16.msra.mxu1 %v1344_v13  ;;  %1222 = vmatprep.subr.bf16.mxu0 %v1345_v14  ;;  %v266_v58 = vld [vmem:[#allocation2 + $0x30] sm:$0xff] }
  0x86   :  { %1244 = vmatprep.subr.bf16.mxu1 %v1346_v15  ;;  %v274_v59 = vpack.c.bf16 %v266_v58, %v266_v58  ;;  %907 = vmatprep.mubr.bf16.mxu0 %v273_v56 }
  0x87   :  { %947 = vmatprep.mubr.bf16.mxu1 %v275_v57 }
  0x88   :  { %1223 = vmatpush3.bf16.msra.mxu0 %v1347_v16 }
  0x89   :  { %1245 = vmatpush3.bf16.msra.mxu1 %v1348_v17  ;;  %1224 = vmatprep.subr.bf16.mxu0 %v1349_v18 }
  0x8a   :  { %1246 = vmatprep.subr.bf16.mxu1 %v1350_v19 }
  0x8c   :  { %1225 = vmatpush3.bf16.msra.mxu0 %v1351_v20 }
  0x8d   :  { %1247 = vmatpush3.bf16.msra.mxu1 %v1352_v21  ;;  %1226 = vmatprep.subr.bf16.mxu0 %v1353_v22 }
  0x8e   :  { %1248 = vmatprep.subr.bf16.mxu1 %v1354_v23 }
  0x90   :  { %1227 = vmatpush3.bf16.msra.mxu0 %v1355_v24 }
  0x91   :  { %1249 = vmatpush3.bf16.msra.mxu1 %v1356_v25  ;;  %1228 = vmatprep.subr.bf16.mxu0 %v1357_v26 }
  0x92   :  { %1250 = vmatprep.subr.bf16.mxu1 %v1358_v27 }
  0x94   :  { %1229 = vmatpush3.bf16.msra.mxu0 %v1359_v38 }
  0x95   :  { %1251 = vmatpush3.bf16.msra.mxu1 %v1360_v39  ;;  %1230 = vmatprep.subr.bf16.mxu0 %v1361_v43 }
  0x96   :  { %1252 = vmatprep.subr.bf16.mxu1 %v1362_v49 }
  0x98   :  { %1231 = vmatpush3.bf16.msra.mxu0 %v1363_v51 }
  0x99   :  { %1253 = vmatpush3.bf16.msra.mxu1 %v1364_v52  ;;  %1269 = vmatprep.subr.bf16.mxu0 %v1521_v0 }
  0x9b   :  { %908 = vmatmul.mubr.bf16.vlgmr.msra.gmra.mrb[4].mxu0 %v272_v55 }
  0x9c   :  { %948 = vmatmul.mubr.bf16.vlgmr.msra.gmra.mrb[4].mxu1 %v274_v59  ;;  %1270 = vmatpush3.bf16.msra.mxu0 %v1366_v60 }
  0x9d   :  { %1271 = vmatprep.subr.bf16.mxu0 %v1521_v0  ;;  %1285 = vmatprep.mubr.msk.bf16.mxu0 %vm1523_vm0, %v1521_v0 }
  0xa0   :  { %1272 = vmatpush3.bf16.msra.mxu0 %v1367_v61 }
  0xa1   :  { %1273 = vmatprep.subr.bf16.mxu0 %v1521_v0 }
  0xa4   :  { %1274 = vmatpush3.bf16.msra.mxu0 %v1368_v62 }
  0xa5   :  { %1275 = vmatprep.subr.bf16.mxu0 %v1521_v0 }
  0xa8   :  { %1276 = vmatpush3.bf16.msra.mxu0 %v1369_v63 }
  0xa9   :  { %1277 = vmatprep.subr.bf16.mxu0 %v1521_v0 }
  0xac   :  { %1278 = vmatpush3.bf16.msra.mxu0 %v1370_v1 }
  0xad   :  { %1279 = vmatprep.subr.bf16.mxu0 %v1521_v0 }
  0xb0   :  { %1280 = vmatpush3.bf16.msra.mxu0 %v1371_v2 }
  0xb1   :  { %1281 = vmatprep.subr.bf16.mxu0 %v1521_v0 }
  0xb4   :  { %1282 = vmatpush3.bf16.msra.mxu0 %v1372_v3 }
  0xb5   :  { %1283 = vmatprep.subr.bf16.mxu0 %v1521_v0 }
  0xb8   :  { %1284 = vmatpush3.bf16.msra.mxu0 %v1373_v4 }
 0x14e   :  { %v1188_v5 = vpop.f32.mrb[0].mxu0 }
 0x14f   :  { %v1210_v6 = vpop.f32.mrb[0].mxu1  ;;  %v1189_v8 = vpop.f32.mrb[1].mxu0 }
 0x150   :  { %v1211_v9 = vpop.f32.mrb[1].mxu1  ;;  %v1190_v10 = vadd.f32 %v1189_v8, %v1188_v5  ;;  %v1191_v12 = vpop.f32.mrb[2].mxu0 }
 0x151   :  { %v1212_v11 = vadd.f32 %v1211_v9, %v1210_v6  ;;  %v1213_v13 = vpop.f32.mrb[2].mxu1  ;;  %v1192_v14 = vpop.f32.mrb[3].mxu0 }
 0x152   :  { %v1214_v15 = vpop.f32.mrb[3].mxu1  ;;  %v830_v16 = vadd.f32 %v1190_v10, %v1098_v7 }
 0x154   :  { %v870_v17 = vadd.f32 %v1212_v11, %v830_v16 }
 0x16e   :  { %v1232_v18 = vpop.f32.mrb[4].mxu0 }
 0x16f   :  { %v1254_v19 = vpop.f32.mrb[4].mxu1  ;;  %v1233_v20 = vpop.f32.mrb[5].mxu0 }
 0x170   :  { %v1255_v0 = vpop.f32.mrb[5].mxu1  ;;  %v1234_v21 = vadd.f32 %v1233_v20, %v1232_v18  ;;  %v1235_v23 = vpop.f32.mrb[6].mxu0 }
 0x171   :  { %v1256_v22 = vadd.f32 %v1255_v0, %v1254_v19  ;;  %v1257_v24 = vpop.f32.mrb[6].mxu1  ;;  %v1236_v25 = vpop.f32.mrb[7].mxu0 }
 0x172   :  { %v1258_v26 = vpop.f32.mrb[7].mxu1  ;;  %v910_v27 = vadd.f32 %v1234_v21, %v870_v17 }
 0x174   :  { %v950_v28 = vadd.f32 %v1256_v22, %v910_v27 }
 0x176   :  { %v955_v29 = vmax.f32 %v950_v28, 0.0 }
 0x178   :  { %v956_v30 = vpack.c.bf16 %v955_v29, %v955_v29 }
 0x17a   :  { %1286 = vmatmul.mubr.bf16.vlgmr.msra.gmra.mrb[8].mxu0 %v956_v30 }
 0x24d   :  { %v1062_v32 = vpop.f32.mrb[8].mxu0 }
 0x24e   :  { %v1063_v33 = vadd.f32 %v1163_v31, %v1062_v32  ;;  %v1287_v34 = vpop.f32.mrb[9].mxu0 }
 0x24f   :  { %v1065_v35 = vpop.f32.mrb[10].mxu0 }
 0x250   :  { %1068 = vst [vmem:[#allocation12] sm:$0xff] %v1063_v33  ;;  %v1288_v37 = vpop.f32.mrb[11].mxu0 }
 0x251   :  { %1495 = shalt.err (!%p1492_p2)
}
 0x252   :  { %s1496_s6 = scalar_lea.hbm %s1694_s7, 128 }
 0x253   :  { %p1497_p3 = scmp.ne.s32.totalorder %s1694_s7, %s1496_s6  ;;  %p1500_p4 = scmp.lt.u32.totalorder %s1496_s6, %s1694_s7 }
 0x255   :  { %p1502_p5 = pnand %p1500_p4, %p1497_p3 }
 0x257   :  { %1505 = shalt.err (!%p1502_p5)
}
 0x258   :  { %1078 = dma.vmem_to_hbm [thread:$0]  %s1076_s27, 128, %s1694_s7, [#allocation5]  }
 0x259   :  { %1512 = dma.done.wait [#allocation5], 128  }
 0x25a   :  { %1513 = vsyncadd [#allocation5], 4294967168 }
 0x25b   :  { %1082 = vsyncpa [#allocation4], 1 }
 0x25c   :  { %1083 = vsyncpa [#allocation7], 1 }
 0x25d   :  { %1084 = vsyncpa [#allocation10], 1 }
 0x25e   :  { %1085 = vsyncpa [#allocation5], 1 }

</bundles_post_ra>
